<compile_context>
chip_gen: v6e
topology: v6e:2x2x1
jax: 0.10.0
libtpu: 0.0.40
codegen_flags: <defaults>
</compile_context>

<pallas_src>
import functools

import jax
import jax.numpy as jnp
import numpy as np
from jax.experimental import pallas as pl
from jax.experimental.pallas import tpu as pltpu

LOG_STD_MIN = -20.0
LOG_STD_MAX = 2.0


def _policy_mlp_kernel(x_ref, w1_ref, b1_ref, w2_ref, b2_ref, w3_ref, b3_ref,
                       out_ref):
    """Fused MLP hot path: 3 MXU matmuls + ReLU + lane-masked clamp, per M-tile."""
    x = x_ref[...].astype(jnp.float32)
    h1 = jnp.dot(x, w1_ref[...], preferred_element_type=jnp.float32) + b1_ref[...]
    h1 = jnp.maximum(h1, 0.0)                                   # ReLU
    h2 = jnp.dot(h1, w2_ref[...], preferred_element_type=jnp.float32) + b2_ref[...]
    h2 = jnp.maximum(h2, 0.0)                                   # ReLU
    out = jnp.dot(h2, w3_ref[...], preferred_element_type=jnp.float32) + b3_ref[...]

    # Clamp only the log_std lanes (lanes >= num_actions) — no lane slicing,
    # single wide store.
    num_actions = out_ref.shape[-1] // 2
    lane = jax.lax.broadcasted_iota(jnp.int32, out.shape, dimension=1)
    is_log_std = lane >= num_actions
    out_ref[...] = jnp.where(is_log_std,
                             jnp.clip(out, LOG_STD_MIN, LOG_STD_MAX),
                             out)


def init_gaussian_policy_params(key, num_inputs, num_actions,
                                hidden_units=(256, 256)):
    """Deterministic Xavier-uniform init (matches weights_init_xavier semantics)."""
    h1, h2 = hidden_units
    dims = [(num_inputs, h1), (h1, h2), (h2, 2 * num_actions)]
    params = {}
    for idx, (fan_in, fan_out) in enumerate(dims, start=1):
        key, wk = jax.random.split(key)
        limit = float(np.sqrt(6.0 / (fan_in + fan_out)))
        params[f"w{idx}"] = jax.random.uniform(
            wk, (fan_in, fan_out), jnp.float32, -limit, limit)
        params[f"b{idx}"] = jnp.zeros((1, fan_out), jnp.float32)
    return params


@functools.partial(jax.jit, static_argnames=("num_actions",))
def gaussian_policy_forward(states, params, *, num_actions):
    """Returns (mean, log_std), each of shape (T, B, num_actions), float32."""
    T, B = states.shape[0], states.shape[1]
    M = T * B
    x = states.reshape(M, -1)          # keep native dtype; cast inside kernel
    num_inputs = x.shape[1]
    h1 = params["w1"].shape[1]
    h2 = params["w2"].shape[1]
    two_a = 2 * num_actions

    # Tile the M axis. TM >= 512 at production sizes; shrink (multiple of 8)
    # for small M so the toy test doesn't over-pad.
    TM = 512
    if M < TM:
        TM = max(8, -(-M // 8) * 8)
    M_pad = -(-M // TM) * TM
    if M_pad != M:
        x = jnp.pad(x, ((0, M_pad - M), (0, 0)))   # pad rows never read back
    grid = (M_pad // TM,)

    flops = 2 * M_pad * (num_inputs * h1 + h1 * h2 + h2 * two_a)
    bytes_accessed = (
        M_pad * num_inputs * x.dtype.itemsize                      # x read
        + 4 * (num_inputs * h1 + h1 * h2 + h2 * two_a              # weights
               + h1 + h2 + two_a)                                  # biases
        + 4 * M_pad * two_a)                                       # output write

    out = pl.pallas_call(
        _policy_mlp_kernel,
        out_shape=jax.ShapeDtypeStruct((M_pad, two_a), jnp.float32),
        grid=grid,
        in_specs=[
            pl.BlockSpec((TM, num_inputs), lambda i: (i, 0)),      # x tile
            pl.BlockSpec((num_inputs, h1), lambda i: (0, 0)),      # w1 (resident)
            pl.BlockSpec((1, h1), lambda i: (0, 0)),               # b1
            pl.BlockSpec((h1, h2), lambda i: (0, 0)),              # w2
            pl.BlockSpec((1, h2), lambda i: (0, 0)),               # b2
            pl.BlockSpec((h2, two_a), lambda i: (0, 0)),           # w3
            pl.BlockSpec((1, two_a), lambda i: (0, 0)),            # b3
        ],
        out_specs=pl.BlockSpec((TM, two_a), lambda i: (i, 0)),
        compiler_params=pltpu.CompilerParams(
            dimension_semantics=("parallel",),
            vmem_limit_bytes=32 * 1024 * 1024,
        ),
        cost_estimate=pl.CostEstimate(
            flops=flops, transcendentals=0, bytes_accessed=bytes_accessed),
    )(x,
      params["w1"], params["b1"],
      params["w2"], params["b2"],
      params["w3"], params["b3"])

    out = out[:M]
    mean = out[:, :num_actions].reshape(T, B, num_actions)
    log_std = out[:, num_actions:].reshape(T, B, num_actions)
    return mean, log_std


def _reference_forward(states, params, num_actions):
    T, B = states.shape[0], states.shape[1]
    x = states.astype(jnp.float32).reshape(T * B, -1)
    h1 = jnp.maximum(x @ params["w1"] + params["b1"], 0.0)
    h2 = jnp.maximum(h1 @ params["w2"] + params["b2"], 0.0)
    out = h2 @ params["w3"] + params["b3"]
    mean, log_std = out[:, :num_actions], out[:, num_actions:]
    log_std = jnp.clip(log_std, LOG_STD_MIN, LOG_STD_MAX)
    return (mean.reshape(T, B, num_actions), log_std.reshape(T, B, num_actions))


def _check(states, params, num_actions):
    mean, log_std = gaussian_policy_forward(states, params,
                                            num_actions=num_actions)
    jax.block_until_ready((mean, log_std))
    ref_mean, ref_log_std = _reference_forward(states, params, num_actions)
    np.testing.assert_allclose(np.asarray(mean), np.asarray(ref_mean),
                               rtol=1e-5, atol=1e-5)
    np.testing.assert_allclose(np.asarray(log_std), np.asarray(ref_log_std),
                               rtol=1e-5, atol=1e-5)
    T, B = states.shape[0], states.shape[1]
    assert mean.shape == (T, B, num_actions)
    assert log_std.shape == (T, B, num_actions)
    assert float(jnp.max(log_std)) <= LOG_STD_MAX + 1e-6
    assert float(jnp.min(log_std)) >= LOG_STD_MIN - 1e-6


if __name__ == "__main__":
    num_inputs, num_actions = 16, 4
    hidden_units = (256, 256)

    key = jax.random.PRNGKey(0)
    key, pkey, s1key, s2key = jax.random.split(key, 4)
    params = init_gaussian_policy_params(pkey, num_inputs, num_actions,
                                         hidden_units)

    # Small shape consistent with the module: states (T, B, num_inputs).
    states_small = jax.random.normal(s1key, (8, 2, num_inputs), jnp.float32)
    _check(states_small, params, num_actions)

    # Exercise the tiled path (grid > 1) and tail padding: M = 640 -> pad 1024.
    states_tiled = jax.random.normal(s2key, (80, 8, num_inputs), jnp.float32)
    _check(states_tiled, params, num_actions)

    print("KERNEL_OK")
</pallas_src>

<mosaic_0001>
module attributes {stable_mosaic.version = 11 : i64} {
  func.func @_policy_mlp_kernel(%arg0: i32, %arg1: memref<16x16xf32, #tpu.memory_space<vmem>>, %arg2: memref<16x256xf32, #tpu.memory_space<vmem>>, %arg3: memref<1x256xf32, #tpu.memory_space<vmem>>, %arg4: memref<256x256xf32, #tpu.memory_space<vmem>>, %arg5: memref<1x256xf32, #tpu.memory_space<vmem>>, %arg6: memref<256x8xf32, #tpu.memory_space<vmem>>, %arg7: memref<1x8xf32, #tpu.memory_space<vmem>>, %arg8: memref<16x8xf32, #tpu.memory_space<vmem>>) attributes {dimension_semantics = [#tpu.dimension_semantics<parallel>], iteration_bounds = array<i64: 1>, scalar_prefetch = 0 : i64, scratch_operands = 0 : i64, tpu.core_type = #tpu.core_type<tc>, window_params = [{transform_indices = @transform_0, window_bounds = array<i64: 16, 16>}, {pipeline_mode = #tpu.pipeline_mode<synchronous>, transform_indices = @transform_1, window_bounds = array<i64: 16, 256>}, {pipeline_mode = #tpu.pipeline_mode<synchronous>, transform_indices = @transform_2, window_bounds = array<i64: 1, 256>}, {pipeline_mode = #tpu.pipeline_mode<synchronous>, transform_indices = @transform_3, window_bounds = array<i64: 256, 256>}, {pipeline_mode = #tpu.pipeline_mode<synchronous>, transform_indices = @transform_4, window_bounds = array<i64: 1, 256>}, {pipeline_mode = #tpu.pipeline_mode<synchronous>, transform_indices = @transform_5, window_bounds = array<i64: 256, 8>}, {pipeline_mode = #tpu.pipeline_mode<synchronous>, transform_indices = @transform_6, window_bounds = array<i64: 1, 8>}, {transform_indices = @transform_7, window_bounds = array<i64: 16, 8>}]} {
    %c0 = arith.constant 0 : index
    %c0_0 = arith.constant 0 : index
    %0 = vector.load %arg1[%c0, %c0_0] : memref<16x16xf32, #tpu.memory_space<vmem>>, vector<16x16xf32>
    %c0_1 = arith.constant 0 : index
    %c0_2 = arith.constant 0 : index
    %1 = vector.load %arg2[%c0_1, %c0_2] : memref<16x256xf32, #tpu.memory_space<vmem>>, vector<16x256xf32>
    %cst = arith.constant dense<0.000000e+00> : vector<16x256xf32>
    %2 = tpu.matmul %0, %1, %cst {dimension_numbers = #tpu.dot_dimension_numbers<[1], [0], [0], [1], [0, 0, 1, 1], [], []>} : vector<16x16xf32>, vector<16x256xf32>, vector<16x256xf32> -> vector<16x256xf32>
    %c0_3 = arith.constant 0 : index
    %c0_4 = arith.constant 0 : index
    %3 = vector.load %arg3[%c0_3, %c0_4] : memref<1x256xf32, #tpu.memory_space<vmem>>, vector<1x256xf32>
    %4 = vector.broadcast %3 : vector<1x256xf32> to vector<16x256xf32>
    %5 = arith.addf %2, %4 : vector<16x256xf32>
    %cst_5 = arith.constant 0.000000e+00 : f32
    %6 = vector.broadcast %cst_5 : f32 to vector<16x256xf32>
    %7 = arith.maximumf %5, %6 : vector<16x256xf32>
    %c0_6 = arith.constant 0 : index
    %c0_7 = arith.constant 0 : index
    %8 = vector.load %arg4[%c0_6, %c0_7] : memref<256x256xf32, #tpu.memory_space<vmem>>, vector<256x256xf32>
    %cst_8 = arith.constant dense<0.000000e+00> : vector<16x256xf32>
    %9 = tpu.matmul %7, %8, %cst_8 {dimension_numbers = #tpu.dot_dimension_numbers<[1], [0], [0], [1], [0, 0, 1, 1], [], []>} : vector<16x256xf32>, vector<256x256xf32>, vector<16x256xf32> -> vector<16x256xf32>
    %c0_9 = arith.constant 0 : index
    %c0_10 = arith.constant 0 : index
    %10 = vector.load %arg5[%c0_9, %c0_10] : memref<1x256xf32, #tpu.memory_space<vmem>>, vector<1x256xf32>
    %11 = vector.broadcast %10 : vector<1x256xf32> to vector<16x256xf32>
    %12 = arith.addf %9, %11 : vector<16x256xf32>
    %cst_11 = arith.constant 0.000000e+00 : f32
    %13 = vector.broadcast %cst_11 : f32 to vector<16x256xf32>
    %14 = arith.maximumf %12, %13 : vector<16x256xf32>
    %c0_12 = arith.constant 0 : index
    %c0_13 = arith.constant 0 : index
    %15 = vector.load %arg6[%c0_12, %c0_13] : memref<256x8xf32, #tpu.memory_space<vmem>>, vector<256x8xf32>
    %cst_14 = arith.constant dense<0.000000e+00> : vector<16x8xf32>
    %16 = tpu.matmul %14, %15, %cst_14 {dimension_numbers = #tpu.dot_dimension_numbers<[1], [0], [0], [1], [0, 0, 1, 1], [], []>} : vector<16x256xf32>, vector<256x8xf32>, vector<16x8xf32> -> vector<16x8xf32>
    %c0_15 = arith.constant 0 : index
    %c0_16 = arith.constant 0 : index
    %17 = vector.load %arg7[%c0_15, %c0_16] : memref<1x8xf32, #tpu.memory_space<vmem>>, vector<1x8xf32>
    %18 = vector.broadcast %17 : vector<1x8xf32> to vector<16x8xf32>
    %19 = arith.addf %16, %18 : vector<16x8xf32>
    %20 = tpu.iota {dimensions = array<i32: 1>} : vector<16x8xi32>
    %c4_i32 = arith.constant 4 : i32
    %21 = vector.broadcast %c4_i32 : i32 to vector<16x8xi32>
    %22 = arith.cmpi sge, %20, %21 : vector<16x8xi32>
    %cst_17 = arith.constant -2.000000e+01 : f32
    %cst_18 = arith.constant 2.000000e+00 : f32
    %23 = vector.broadcast %cst_17 : f32 to vector<16x8xf32>
    %24 = arith.maximumf %23, %19 : vector<16x8xf32>
    %25 = vector.broadcast %cst_18 : f32 to vector<16x8xf32>
    %26 = arith.minimumf %25, %24 : vector<16x8xf32>
    %27 = arith.select %22, %26, %19 : vector<16x8xi1>, vector<16x8xf32>
    %c0_19 = arith.constant 0 : index
    %c0_20 = arith.constant 0 : index
    %28 = vector.load %arg8[%c0_19, %c0_20] : memref<16x8xf32, #tpu.memory_space<vmem>>, vector<16x8xf32>
    tpu.vector_store %arg8[%c0_19, %c0_20], %27 {strides = array<i32>} : memref<16x8xf32, #tpu.memory_space<vmem>>, vector<16x8xf32>,
    return
  }
  func.func @transform_0(%arg0: i32) -> (i32, i32) {
    %c0_i32 = arith.constant 0 : i32
    %c0_i32_0 = arith.constant 0 : i32
    return %arg0, %c0_i32 : i32, i32
  }
  func.func @transform_1(%arg0: i32) -> (i32, i32) {
    %c0_i32 = arith.constant 0 : i32
    %c0_i32_0 = arith.constant 0 : i32
    %c0_i32_1 = arith.constant 0 : i32
    return %c0_i32, %c0_i32_0 : i32, i32
  }
  func.func @transform_2(%arg0: i32) -> (i32, i32) {
    %c0_i32 = arith.constant 0 : i32
    %c0_i32_0 = arith.constant 0 : i32
    %c0_i32_1 = arith.constant 0 : i32
    return %c0_i32, %c0_i32_0 : i32, i32
  }
  func.func @transform_3(%arg0: i32) -> (i32, i32) {
    %c0_i32 = arith.constant 0 : i32
    %c0_i32_0 = arith.constant 0 : i32
    %c0_i32_1 = arith.constant 0 : i32
    return %c0_i32, %c0_i32_0 : i32, i32
  }
  func.func @transform_4(%arg0: i32) -> (i32, i32) {
    %c0_i32 = arith.constant 0 : i32
    %c0_i32_0 = arith.constant 0 : i32
    %c0_i32_1 = arith.constant 0 : i32
    return %c0_i32, %c0_i32_0 : i32, i32
  }
  func.func @transform_5(%arg0: i32) -> (i32, i32) {
    %c0_i32 = arith.constant 0 : i32
    %c0_i32_0 = arith.constant 0 : i32
    %c0_i32_1 = arith.constant 0 : i32
    return %c0_i32, %c0_i32_0 : i32, i32
  }
  func.func @transform_6(%arg0: i32) -> (i32, i32) {
    %c0_i32 = arith.constant 0 : i32
    %c0_i32_0 = arith.constant 0 : i32
    %c0_i32_1 = arith.constant 0 : i32
    return %c0_i32, %c0_i32_0 : i32, i32
  }
  func.func @transform_7(%arg0: i32) -> (i32, i32) {
    %c0_i32 = arith.constant 0 : i32
    %c0_i32_0 = arith.constant 0 : i32
    return %arg0, %c0_i32 : i32, i32
  }
}

</mosaic_0001>

<bundles_post_ra>
// kernel: gaussian_policy_forward.1
= control target key start
LH: loop header
LB: loop body
LE: loop exit
PB: predicated region body
PF: predicated region fallthrough
CT: control target
= control target key end

     0   :  { %12 = vsyncpa [#allocation3], 0  ;;  %s501_s24 = smov [#allocation2]   ;;  %s679_s0 = inlined_call_operand.vmem [shape: f32[16,16], index: 0, kind: input, shape index: {}]   ;;  %s680_s1 = inlined_call_operand.vmem [shape: f32[16,256], index: 1, kind: input, shape index: {}]   ;;  %s681_s2 = inlined_call_operand.vmem [shape: f32[1,256], index: 2, kind: input, shape index: {}]   ;;  %s682_s3 = inlined_call_operand.hbm [shape: f32[256,256], index: 3, kind: input, shape index: {}]   ;;  %s683_s4 = inlined_call_operand.vmem [shape: f32[1,256], index: 4, kind: input, shape index: {}]   ;;  %s684_s5 = inlined_call_operand.vmem [shape: f32[256,8], index: 5, kind: input, shape index: {}]   ;;  %s685_s6 = inlined_call_operand.vmem [shape: f32[1,8], index: 6, kind: input, shape index: {}]   ;;  %s686_s7 = inlined_call_operand.vmem [shape: f32[16,8], index: 7, kind: output, shape index: {}]  }
   0x1   :  { %s24_s25 = sshll.u32 %s501_s24, 4  ;;  %s25_s25 = int_to_ptr.vmem [resolvable:$true] %s24_s25 }
   0x2   :  { %s487_s26 = scalar_lea.vmem %s25_s25, 8192  ;;  %p492_p1 = scmp.lt.s32.totalorder %s25_s25, %s25_s25 }
   0x3   :  { %p488_p0 = scmp.ne.s32.totalorder %s25_s25, %s487_s26  ;;  %p493_p2 = scmp.lt.s32.totalorder %s487_s26, %s487_s26 }
   0x5   :  { %p494_p3 = por %p493_p2, %p492_p1 }
   0x7   :  { %p495_p4 = pnand %p494_p3, %p488_p0 }
   0x9   :  { %498 = shalt.err (!%p495_p4)
}
   0xa   :  { %s502_s27 = smov 256   ;;  %s503_s28 = smov 16  }
   0xb   :  { %30 = dma.hbm_to_vmem [thread:$0]  %s682_s3, 8192, %s25_s25, [#allocation3], %s502_s27, %s502_s27, %s503_s28  }
   0xc   :  { %499 = dma.done.wait [#allocation3], 8192  }
   0xd   :  { %500 = vsyncadd [#allocation3], 4294959104  ;;  %v504_v0 = vmov 0.0   ;;  %v45_v1 = vld [vmem:[%s680_s1 + $0x18] sm:$0xff]  ;;  %v44_v2 = vld [vmem:[%s680_s1 + $0x10] sm:$0xff]  ;;  %vm58_vm0 = vcmask 130048  }
   0xe   :  { %129 = vmatprep.mubr.f32.mxu0 %v504_v0  ;;  %v43_v3 = vld [vmem:[%s680_s1 + $0x8] sm:$0xff]  ;;  %93 = vmatprep.subr.mxu0 %v45_v1  ;;  %v42_v4 = vld [vmem:[%s680_s1] sm:$0xff]  ;;  %v177_v6 = vld [vmem:[#allocation2 + $0xf8] sm:$0xff]  ;;  %vm426_vm2 = vcmask 64512  }
   0xf   :  { %v40_v5 = vld [vmem:[%s679_s0] sm:$0xff]  ;;  %94 = vmatpush1.msra.mxu0 %v44_v2  ;;  %v176_v7 = vld [vmem:[#allocation2 + $0xf0] sm:$0xff]  ;;  %v175_v8 = vld [vmem:[#allocation2 + $0xe8] sm:$0xff]  ;;  %222 = vmatprep.subr.mxu1 %v177_v6 }
  0x10   :  { %95 = vmatprep.subr.mxu0 %v43_v3  ;;  %v174_v9 = vld [vmem:[#allocation2 + $0xe0] sm:$0xff]  ;;  %223 = vmatpush1.msra.mxu1 %v176_v7  ;;  %v173_v10 = vld [vmem:[#allocation2 + $0xd8] sm:$0xff]  ;;  %v172_v11 = vld [vmem:[#allocation2 + $0xd0] sm:$0xff] }
  0x11   :  { %96 = vmatpush1.msra.mxu0 %v42_v4  ;;  %224 = vmatprep.subr.mxu1 %v175_v8  ;;  %v41_v12 = vld [vmem:[%s679_s0 + $0x8] sm:$0xff]  ;;  %v170_v14 = vld [vmem:[#allocation2 + $0xc0] sm:$0xff]  ;;  %v169_v15 = vld [vmem:[#allocation2 + $0xb8] sm:$0xff] }
  0x12   :  { %434 = vmatmul.mubr.msk.f32.vlgmr.msra.gmra.mxu0 %vm58_vm0, %v40_v5  ;;  %225 = vmatpush1.msra.mxu1 %v174_v9  ;;  %v171_v13 = vld [vmem:[#allocation2 + $0xc8] sm:$0xff]  ;;  %v168_v16 = vld [vmem:[#allocation2 + $0xb0] sm:$0xff]  ;;  %v166_v18 = vld [vmem:[#allocation2 + $0xa0] sm:$0xff] }
  0x13   :  { %135 = vmatprep.mubr.f32.mxu0 %v504_v0  ;;  %226 = vmatprep.subr.mxu1 %v173_v10  ;;  %v167_v17 = vld [vmem:[#allocation2 + $0xa8] sm:$0xff]  ;;  %v165_v19 = vld [vmem:[#allocation2 + $0x98] sm:$0xff]  ;;  %v164_v20 = vld [vmem:[#allocation2 + $0x90] sm:$0xff] }
  0x14   :  { %227 = vmatpush1.msra.mxu1 %v172_v11  ;;  %v163_v21 = vld [vmem:[#allocation2 + $0x88] sm:$0xff]  ;;  %v162_v22 = vld [vmem:[#allocation2 + $0x80] sm:$0xff]  ;;  %v161_v23 = vld [vmem:[#allocation2 + $0x78] sm:$0xff] }
  0x15   :  { %228 = vmatprep.subr.mxu1 %v171_v13  ;;  %v160_v24 = vld [vmem:[#allocation2 + $0x70] sm:$0xff]  ;;  %v159_v25 = vld [vmem:[#allocation2 + $0x68] sm:$0xff]  ;;  %v158_v26 = vld [vmem:[#allocation2 + $0x60] sm:$0xff] }
  0x16   :  { %435 = vmatmul.mubr.msk.f32.gmra.mxu0 %vm58_vm0, %v41_v12  ;;  %229 = vmatpush1.msra.mxu1 %v170_v14  ;;  %v157_v27 = vld [vmem:[#allocation2 + $0x58] sm:$0xff]  ;;  %v156_v28 = vld [vmem:[#allocation2 + $0x50] sm:$0xff]  ;;  %v155_v29 = vld [vmem:[#allocation2 + $0x48] sm:$0xff] }
  0x17   :  { %230 = vmatprep.subr.mxu1 %v169_v15  ;;  %v154_v30 = vld [vmem:[#allocation2 + $0x40] sm:$0xff]  ;;  %v153_v31 = vld [vmem:[#allocation2 + $0x38] sm:$0xff]  ;;  %v152_v32 = vld [vmem:[#allocation2 + $0x30] sm:$0xff] }
  0x18   :  { %231 = vmatpush1.msra.mxu1 %v168_v16  ;;  %v151_v33 = vld [vmem:[#allocation2 + $0x28] sm:$0xff]  ;;  %v150_v34 = vld [vmem:[#allocation2 + $0x20] sm:$0xff]  ;;  %v149_v35 = vld [vmem:[#allocation2 + $0x18] sm:$0xff] }
  0x19   :  { %232 = vmatprep.subr.mxu1 %v167_v17  ;;  %v148_v36 = vld [vmem:[#allocation2 + $0x10] sm:$0xff]  ;;  %v147_v37 = vld [vmem:[#allocation2 + $0x8] sm:$0xff]  ;;  %v146_v38 = vld [vmem:[#allocation2] sm:$0xff] }
  0x1a   :  { %233 = vmatpush1.msra.mxu1 %v166_v18  ;;  %v209_v39 = vld [vmem:[#allocation2 + $0x1f8] sm:$0xff]  ;;  %v208_v40 = vld [vmem:[#allocation2 + $0x1f0] sm:$0xff]  ;;  %v207_v41 = vld [vmem:[#allocation2 + $0x1e8] sm:$0xff] }
  0x1b   :  { %234 = vmatprep.subr.mxu1 %v165_v19  ;;  %v206_v42 = vld [vmem:[#allocation2 + $0x1e0] sm:$0xff]  ;;  %v205_v43 = vld [vmem:[#allocation2 + $0x1d8] sm:$0xff]  ;;  %v204_v44 = vld [vmem:[#allocation2 + $0x1d0] sm:$0xff] }
  0x1c   :  { %235 = vmatpush1.msra.mxu1 %v164_v20  ;;  %v203_v45 = vld [vmem:[#allocation2 + $0x1c8] sm:$0xff]  ;;  %v202_v46 = vld [vmem:[#allocation2 + $0x1c0] sm:$0xff]  ;;  %v201_v47 = vld [vmem:[#allocation2 + $0x1b8] sm:$0xff] }
  0x1d   :  { %236 = vmatprep.subr.mxu1 %v163_v21  ;;  %v200_v48 = vld [vmem:[#allocation2 + $0x1b0] sm:$0xff]  ;;  %v199_v49 = vld [vmem:[#allocation2 + $0x1a8] sm:$0xff]  ;;  %v198_v50 = vld [vmem:[#allocation2 + $0x1a0] sm:$0xff] }
  0x1e   :  { %237 = vmatpush1.msra.mxu1 %v162_v22  ;;  %v197_v51 = vld [vmem:[#allocation2 + $0x198] sm:$0xff]  ;;  %v196_v52 = vld [vmem:[#allocation2 + $0x190] sm:$0xff]  ;;  %v195_v53 = vld [vmem:[#allocation2 + $0x188] sm:$0xff] }
  0x1f   :  { %238 = vmatprep.subr.mxu1 %v161_v23  ;;  %v194_v54 = vld [vmem:[#allocation2 + $0x180] sm:$0xff]  ;;  %v193_v55 = vld [vmem:[#allocation2 + $0x178] sm:$0xff]  ;;  %v192_v56 = vld [vmem:[#allocation2 + $0x170] sm:$0xff] }
  0x20   :  { %239 = vmatpush1.msra.mxu1 %v160_v24  ;;  %v191_v57 = vld [vmem:[#allocation2 + $0x168] sm:$0xff]  ;;  %v190_v58 = vld [vmem:[#allocation2 + $0x160] sm:$0xff]  ;;  %v189_v59 = vld [vmem:[#allocation2 + $0x158] sm:$0xff] }
  0x21   :  { %240 = vmatprep.subr.mxu1 %v159_v25  ;;  %v188_v60 = vld [vmem:[#allocation2 + $0x150] sm:$0xff]  ;;  %v187_v61 = vld [vmem:[#allocation2 + $0x148] sm:$0xff]  ;;  %v186_v62 = vld [vmem:[#allocation2 + $0x140] sm:$0xff] }
  0x22   :  { %241 = vmatpush1.msra.mxu1 %v158_v26  ;;  %v185_v63 = vld [vmem:[#allocation2 + $0x138] sm:$0xff]  ;;  %v184_v0 = vld [vmem:[#allocation2 + $0x130] sm:$0xff]  ;;  %v183_v1 = vld [vmem:[#allocation2 + $0x128] sm:$0xff] }
  0x23   :  { %242 = vmatprep.subr.mxu1 %v157_v27  ;;  %v182_v2 = vld [vmem:[#allocation2 + $0x120] sm:$0xff]  ;;  %v181_v3 = vld [vmem:[#allocation2 + $0x118] sm:$0xff]  ;;  %v180_v4 = vld [vmem:[#allocation2 + $0x110] sm:$0xff] }
  0x24   :  { %243 = vmatpush1.msra.mxu1 %v156_v28  ;;  %v179_v5 = vld [vmem:[#allocation2 + $0x108] sm:$0xff]  ;;  %v178_v6 = vld [vmem:[#allocation2 + $0x100] sm:$0xff]  ;;  %v334_v7 = vld [vmem:[%s684_s5 + $0xf8] sm:$0xff] }
  0x25   :  { %244 = vmatprep.subr.mxu1 %v155_v29  ;;  %v318_v8 = vld [vmem:[%s684_s5 + $0x78] sm:$0xff]  ;;  %v333_v9 = vld [vmem:[%s684_s5 + $0xf0] sm:$0xff]  ;;  %437 = vmatprep.subr.mxu0 %v334_v7  ;;  %v332_v11 = vld [vmem:[%s684_s5 + $0xe8] sm:$0xff] }
  0x26   :  { %245 = vmatpush1.msra.mxu1 %v154_v30  ;;  %v317_v10 = vld [vmem:[%s684_s5 + $0x70] sm:$0xff]  ;;  %438 = vmatpush3.msra.mxu0 %v318_v8  ;;  %v316_v12 = vld [vmem:[%s684_s5 + $0x68] sm:$0xff]  ;;  %v331_v13 = vld [vmem:[%s684_s5 + $0xe0] sm:$0xff] }
  0x27   :  { %246 = vmatprep.subr.mxu1 %v153_v31  ;;  %439 = vmatprep.subr.mxu0 %v333_v9  ;;  %v315_v14 = vld [vmem:[%s684_s5 + $0x60] sm:$0xff]  ;;  %v330_v15 = vld [vmem:[%s684_s5 + $0xd8] sm:$0xff]  ;;  %v329_v17 = vld [vmem:[%s684_s5 + $0xd0] sm:$0xff]  ;;  %v48_v31 = vlaneseq }
  0x28   :  { %247 = vmatpush1.msra.mxu1 %v152_v32  ;;  %440 = vmatpush3.msra.mxu0 %v317_v10  ;;  %v314_v16 = vld [vmem:[%s684_s5 + $0x58] sm:$0xff]  ;;  %v313_v18 = vld [vmem:[%s684_s5 + $0x50] sm:$0xff]  ;;  %v328_v19 = vld [vmem:[%s684_s5 + $0xc8] sm:$0xff] }
  0x29   :  { %248 = vmatprep.subr.mxu1 %v151_v33  ;;  %441 = vmatprep.subr.mxu0 %v332_v11  ;;  %v312_v20 = vld [vmem:[%s684_s5 + $0x48] sm:$0xff]  ;;  %v327_v21 = vld [vmem:[%s684_s5 + $0xc0] sm:$0xff]  ;;  %v326_v23 = vld [vmem:[%s684_s5 + $0xb8] sm:$0xff]  ;;  %v49_v32 = vshrl.u32 %v48_v31, 7 }
  0x2a   :  { %249 = vmatpush1.msra.mxu1 %v150_v34  ;;  %442 = vmatpush3.msra.mxu0 %v316_v12  ;;  %v311_v22 = vld [vmem:[%s684_s5 + $0x40] sm:$0xff]  ;;  %v310_v24 = vld [vmem:[%s684_s5 + $0x38] sm:$0xff]  ;;  %v325_v25 = vld [vmem:[%s684_s5 + $0xb0] sm:$0xff] }
  0x2b   :  { %250 = vmatprep.subr.mxu1 %v149_v35  ;;  %443 = vmatprep.subr.mxu0 %v331_v13  ;;  %v309_v26 = vld [vmem:[%s684_s5 + $0x30] sm:$0xff]  ;;  %v324_v27 = vld [vmem:[%s684_s5 + $0xa8] sm:$0xff]  ;;  %v323_v29 = vld [vmem:[%s684_s5 + $0xa0] sm:$0xff]  ;;  %v50_v33 = vsub.s32 0, %v49_v32  ;;  %v54_v35 = vsub.s32 1, %v49_v32  ;;  %v418_v13 = vand.u32 127, %v48_v31 }
  0x2c   :  { %251 = vmatpush1.msra.mxu1 %v148_v36  ;;  %444 = vmatpush3.msra.mxu0 %v315_v14  ;;  %v308_v28 = vld [vmem:[%s684_s5 + $0x28] sm:$0xff]  ;;  %v307_v30 = vld [vmem:[%s684_s5 + $0x20] sm:$0xff] }
  0x2d   :  { %252 = vmatprep.subr.mxu1 %v147_v37  ;;  %445 = vmatprep.subr.mxu0 %v330_v15  ;;  %v46_v34 = vld [vmem:[%s681_s2] sm:$0x3]  ;;  %vm419_vm1 = vcmp.ge.s32.totalorder %v418_v13, 4 }
  0x2e   :  { %253 = vmatpush1.msra.mxu1 %v146_v38  ;;  %446 = vmatpush3.msra.mxu0 %v314_v16  ;;  %v51_v36 = vrot.slane %v46_v34, %v50_v33  ;;  %v55_v37 = vrot.slane %v46_v34, %v54_v35  ;;  %v436_v10 = vld [vmem:[%s685_s6] ss:$0 sm:$0xff] }
  0x2f   :  { %254 = vmatprep.subr.mxu1 %v209_v39  ;;  %447 = vmatprep.subr.mxu0 %v329_v17 }
  0x30   :  { %255 = vmatpush2.msra.mxu1 %v208_v40  ;;  %448 = vmatpush3.msra.mxu0 %v313_v18 }
  0x31   :  { %256 = vmatprep.subr.mxu1 %v207_v41  ;;  %449 = vmatprep.subr.mxu0 %v328_v19 }
  0x32   :  { %257 = vmatpush2.msra.mxu1 %v206_v42  ;;  %450 = vmatpush3.msra.mxu0 %v312_v20 }
  0x33   :  { %258 = vmatprep.subr.mxu1 %v205_v43  ;;  %451 = vmatprep.subr.mxu0 %v327_v21 }
  0x34   :  { %259 = vmatpush2.msra.mxu1 %v204_v44  ;;  %452 = vmatpush3.msra.mxu0 %v311_v22 }
  0x35   :  { %260 = vmatprep.subr.mxu1 %v203_v45  ;;  %453 = vmatprep.subr.mxu0 %v326_v23 }
  0x36   :  { %261 = vmatpush2.msra.mxu1 %v202_v46  ;;  %454 = vmatpush3.msra.mxu0 %v310_v24 }
  0x37   :  { %262 = vmatprep.subr.mxu1 %v201_v47  ;;  %455 = vmatprep.subr.mxu0 %v325_v25 }
  0x38   :  { %263 = vmatpush2.msra.mxu1 %v200_v48  ;;  %456 = vmatpush3.msra.mxu0 %v309_v26 }
  0x39   :  { %264 = vmatprep.subr.mxu1 %v199_v49  ;;  %457 = vmatprep.subr.mxu0 %v324_v27 }
  0x3a   :  { %265 = vmatpush2.msra.mxu1 %v198_v50  ;;  %458 = vmatpush3.msra.mxu0 %v308_v28  ;;  %v322_v50 = vld [vmem:[%s684_s5 + $0x98] sm:$0xff] }
  0x3b   :  { %266 = vmatprep.subr.mxu1 %v197_v51  ;;  %459 = vmatprep.subr.mxu0 %v323_v29  ;;  %v306_v51 = vld [vmem:[%s684_s5 + $0x18] sm:$0xff] }
  0x3c   :  { %267 = vmatpush2.msra.mxu1 %v196_v52  ;;  %460 = vmatpush3.msra.mxu0 %v307_v30  ;;  %v321_v52 = vld [vmem:[%s684_s5 + $0x90] sm:$0xff] }
  0x3d   :  { %268 = vmatprep.subr.mxu1 %v195_v53  ;;  %461 = vmatprep.subr.mxu0 %v322_v50  ;;  %v305_v53 = vld [vmem:[%s684_s5 + $0x10] sm:$0xff] }
  0x3e   :  { %269 = vmatpush2.msra.mxu1 %v194_v54  ;;  %462 = vmatpush3.msra.mxu0 %v306_v51  ;;  %v320_v54 = vld [vmem:[%s684_s5 + $0x88] sm:$0xff] }
  0x3f   :  { %270 = vmatprep.subr.mxu1 %v193_v55  ;;  %463 = vmatprep.subr.mxu0 %v321_v52  ;;  %v304_v55 = vld [vmem:[%s684_s5 + $0x8] sm:$0xff] }
  0x40   :  { %271 = vmatpush2.msra.mxu1 %v192_v56  ;;  %464 = vmatpush3.msra.mxu0 %v305_v53  ;;  %v319_v56 = vld [vmem:[%s684_s5 + $0x80] sm:$0xff] }
  0x41   :  { %272 = vmatprep.subr.mxu1 %v191_v57  ;;  %465 = vmatprep.subr.mxu0 %v320_v54  ;;  %v303_v57 = vld [vmem:[%s684_s5] sm:$0xff] }
  0x42   :  { %273 = vmatpush2.msra.mxu1 %v190_v58  ;;  %466 = vmatpush3.msra.mxu0 %v304_v55  ;;  %v210_v58 = vld [vmem:[%s683_s4] sm:$0x3] }
  0x43   :  { %274 = vmatprep.subr.mxu1 %v189_v59  ;;  %467 = vmatprep.subr.mxu0 %v319_v56  ;;  %v215_v59 = vrot.slane %v210_v58, %v50_v33 }
  0x44   :  { %275 = vmatpush2.msra.mxu1 %v188_v60  ;;  %468 = vmatpush3.msra.mxu0 %v303_v57  ;;  %v219_v60 = vrot.slane %v210_v58, %v54_v35 }
  0x45   :  { %276 = vmatprep.subr.mxu1 %v187_v61 }
  0x46   :  { %277 = vmatpush2.msra.mxu1 %v186_v62 }
  0x47   :  { %278 = vmatprep.subr.mxu1 %v185_v63 }
  0x48   :  { %279 = vmatpush2.msra.mxu1 %v184_v0 }
  0x49   :  { %280 = vmatprep.subr.mxu1 %v183_v1 }
  0x4a   :  { %281 = vmatpush2.msra.mxu1 %v182_v2 }
  0x4b   :  { %282 = vmatprep.subr.mxu1 %v181_v3 }
  0x4c   :  { %283 = vmatpush2.msra.mxu1 %v180_v4 }
  0x4d   :  { %284 = vmatprep.subr.mxu1 %v179_v5 }
  0x4e   :  { %285 = vmatpush2.msra.mxu1 %v178_v6 }
  0xd2   :  { %v131_v38 = vpop.f32.mrf.mxu0 }
  0xd3   :  { %v132_v39 = vadd.f32 %v131_v38, %v51_v36 }
  0xd4   :  { %v133_v40 = vpop.f32.mrf.mxu0 }
  0xd5   :  { %v134_v41 = vadd.f32 %v133_v40, %v55_v37  ;;  %v142_v44 = vmax.f32 %v132_v39, 0.0 }
  0xd6   :  { %v137_v42 = vpop.f32.mrf.mxu0 }
  0xd7   :  { %v143_v43 = vmax.f32 %v134_v41, 0.0  ;;  %v138_v45 = vadd.f32 %v137_v42, %v51_v36 }
  0xd8   :  { %v139_v46 = vpop.f32.mrf.mxu0 }
  0xd9   :  { %v140_v47 = vadd.f32 %v139_v46, %v55_v37  ;;  %286 = vmatprep.mubr.f32.mxu1 %v143_v43  ;;  %v144_v49 = vmax.f32 %v138_v45, 0.0 }
  0xda   :  { %287 = vmatmul.mubr.f32.vlgmr.msra.gmra.mxu1 %v142_v44 }
  0xdb   :  { %v145_v48 = vmax.f32 %v140_v47, 0.0 }
  0xdd   :  { %292 = vmatprep.mubr.f32.mxu1 %v145_v48 }
  0xde   :  { %293 = vmatmul.mubr.f32.gmra.mxu1 %v144_v49 }
 0x19a   :  { %v288_v61 = vpop.f32.mrf.mxu1 }
 0x19b   :  { %v289_v62 = vadd.f32 %v288_v61, %v215_v59 }
 0x19c   :  { %v290_v63 = vpop.f32.mrf.mxu1 }
 0x19d   :  { %v291_v0 = vadd.f32 %v290_v63, %v219_v60  ;;  %v299_v3 = vmax.f32 %v289_v62, 0.0 }
 0x19e   :  { %v294_v1 = vpop.f32.mrf.mxu1 }
 0x19f   :  { %v300_v2 = vmax.f32 %v291_v0, 0.0  ;;  %v295_v4 = vadd.f32 %v294_v1, %v215_v59 }
 0x1a0   :  { %v296_v5 = vpop.f32.mrf.mxu1 }
 0x1a1   :  { %v297_v6 = vadd.f32 %v296_v5, %v219_v60  ;;  %406 = vmatprep.mubr.f32.mxu0 %v300_v2  ;;  %v301_v8 = vmax.f32 %v295_v4, 0.0 }
 0x1a2   :  { %407 = vmatmul.mubr.f32.vlgmr.msra.gmra.mxu0 %v299_v3 }
 0x1a3   :  { %v302_v7 = vmax.f32 %v297_v6, 0.0 }
 0x1a5   :  { %411 = vmatprep.mubr.f32.mxu0 %v302_v7 }
 0x1a6   :  { %412 = vmatmul.mubr.f32.gmra.mxu0 %v301_v8 }
 0x262   :  { %v469_v9 = vpop.f32.mrf.mxu0 }
 0x264   :  { %v470_v11 = vpop.f32.mrf.mxu0 }
 0x265   :  { %v471_v12 = vadd.f32 %v470_v11, %v469_v9 }
 0x266   :  { %v472_v14 = vpop.f32.mrf.mxu0 }
 0x267   :  { %v409_v15 = vadd.f32 %v471_v12, %v436_v10 }
 0x268   :  { %v473_v16 = vpop.f32.mrf.mxu0 }
 0x269   :  { %v420_v17 = vmax.f32 %v409_v15, -20.0  ;;  %v474_v18 = vadd.f32 %v473_v16, %v472_v14 }
 0x26b   :  { %v422_v19 = vmin.f32 %v420_v17, 2.0  ;;  %v414_v20 = vadd.f32 %v474_v18, %v436_v10 }
 0x26d   :  { %v424_v21 = vsel %vm419_vm1, %v422_v19, %v409_v15  ;;  %v421_v22 = vmax.f32 %v414_v20, -20.0 }
 0x26e   :  { %427 = vst.msk [vmem:[%s686_s7] sm:$0xff] %vm426_vm2, %v424_v21 }
 0x26f   :  { %v423_v23 = vmin.f32 %v421_v22, 2.0 }
 0x271   :  { %v425_v24 = vsel %vm419_vm1, %v423_v23, %v414_v20 }
 0x272   :  { %428 = vst.msk [vmem:[%s686_s7 + $0x8] sm:$0xff] %vm426_vm2, %v425_v24 }
 0x273   :  { %433 = vsyncpa [#allocation3], 1 }

</bundles_post_ra>
